<compile_context>
chip_gen: v6e
topology: v6e:2x2x1
jax: 0.10.0
libtpu: 0.0.40
codegen_flags: <defaults>
</compile_context>

<pallas_src>
import functools

import jax
import jax.numpy as jnp
from jax.experimental import pallas as pl
from jax.experimental.pallas import tpu as pltpu


_MIB = 1024 * 1024
_LN_EPS = 1e-5  # torch.nn.LayerNorm default


def _round_up(x, m):
    return ((x + m - 1) // m) * m


@functools.lru_cache(maxsize=None)
def _vmem_capacity_bytes():
    try:
        return int(pltpu.get_tpu_info().vmem_capacity_bytes)
    except Exception:
        return 64 * _MIB  # v7x-safe fallback


def _layernorm(h, gamma, beta, true_dim):
    """LayerNorm over the last axis using the TRUE (unpadded) column count.

    Padded columns of `h` are exactly zero by construction, so the mean over
    the true columns is sum(h)/true_dim. The variance sum masks out the
    padded columns (only when padding exists -- static branch, zero cost for
    lane-aligned D).
    """
    padded_dim = h.shape[-1]
    inv_n = jnp.float32(1.0 / true_dim)
    mu = jnp.sum(h, axis=-1, keepdims=True) * inv_n
    d = h - mu
    dd = d * d
    if padded_dim != true_dim:  # static (trace-time) branch
        col = jax.lax.broadcasted_iota(jnp.int32, (1, padded_dim), 1)
        dd = jnp.where(col < true_dim, dd, 0.0)
    var = jnp.sum(dd, axis=-1, keepdims=True) * inv_n
    return d * jax.lax.rsqrt(var + _LN_EPS) * gamma + beta


def mask_predictor_kernel(x_ref,
                          w1_ref, b1_ref, g1_ref, be1_ref,
                          w2_ref, b2_ref, g2_ref, be2_ref,
                          o_ref, *, d_true, h_true):
    # ---- Linear(D -> 2D): bf16 MXU inputs, f32 accumulation ----
    x = x_ref[...].astype(jnp.bfloat16)
    h = jnp.dot(x, w1_ref[...], preferred_element_type=jnp.float32)
    h = h + b1_ref[...]

    # ---- LayerNorm(2D), f32, padding-aware ----
    h = _layernorm(h, g1_ref[...], be1_ref[...], h_true)

    # ---- GELU (tanh approximation -> EUP slot) ----
    h = jax.nn.gelu(h, approximate=True)

    # ---- Dropout(0.2): identity in eval mode ----
    # TODO(synk): training-mode dropout would need pltpu.prng_seed +
    #             pltpu.prng_random_bits to build a keep-mask; eval-mode here.

    # ---- Linear(2D -> D): bf16 MXU inputs, f32 accumulation ----
    y = jnp.dot(h.astype(jnp.bfloat16), w2_ref[...],
                preferred_element_type=jnp.float32)
    y = y + b2_ref[...]

    # ---- LayerNorm(D), f32, padding-aware ----
    y = _layernorm(y, g2_ref[...], be2_ref[...], d_true)

    o_ref[...] = y.astype(o_ref.dtype)


def _plan_tile_and_vmem(N, D, Dp, Hp, x_itemsize, out_itemsize, tm_req):
    """Static (Python) planning of row tile + vmem limit, generation-aware."""
    cap = _vmem_capacity_bytes()
    budget = cap - max(8 * _MIB, cap // 8)   # ~112 MiB on v5e/v6e, ~56 MiB on v7x

    tm = tm_req
    if N <= tm:
        # Small inputs: clamp the tile and aim for >= 2 grid steps so both
        # TensorCores get work on v7x (harmless on v5e/v6e).
        tm = max(8, _round_up(pl.cdiv(N, 2), 8))
    tm = _round_up(tm, 8)

    def footprint(t):
        weights = (D * Hp + Hp * Dp) * 2              # bf16 W1+W2, single-buffered
        vecs = (3 * Hp + 3 * Dp) * 4                  # biases / LN gamma+beta
        rows = 2 * t * D * x_itemsize + 2 * t * Dp * out_itemsize  # dbl-buffered
        interm = 3 * t * Hp * 4                       # f32 intermediates in body
        return weights + vecs + rows + interm

    # Feasibility guard (matters for large D on v7x's 64 MiB VMEM).
    while tm > 8 and footprint(tm) > budget:
        tm = max(8, _round_up(tm // 2, 8))
    # TODO(synk): for very large D (>~1.5k on v7x) add an H-blocking inner
    #             pipeline over W1/W2 column blocks with a two-pass LN1.

    fp = footprint(tm)
    vmem_limit = int(min(max(2 * fp, 32 * _MIB), budget))
    vmem_limit = max(vmem_limit, min(fp + 4 * _MIB, cap))
    return tm, vmem_limit


@functools.partial(jax.jit, static_argnames=("tm",))
def mask_predictor(x, prepared_params, *, tm=512):
    """x: (..., D) float32 or bfloat16. Returns (..., D) in x.dtype."""
    w1, b1, g1, be1, w2, b2, g2, be2 = prepared_params

    orig_shape = x.shape
    D = orig_shape[-1]
    H = 2 * D
    Hp = w1.shape[1]        # lane-padded hidden dim (multiple of 128)
    Dp = w2.shape[1]        # lane-padded output dim (multiple of 128)
    N = 1
    for s in orig_shape[:-1]:
        N *= s

    x2 = x.reshape(N, D)            # keep caller dtype; bf16 cast in-kernel
    out_dtype = x.dtype

    tm_eff, vmem_limit = _plan_tile_and_vmem(
        N, D, Dp, Hp, x2.dtype.itemsize, jnp.dtype(out_dtype).itemsize, tm)
    n_tiles = pl.cdiv(N, tm_eff)

    kernel = functools.partial(mask_predictor_kernel, d_true=D, h_true=H)

    # Row tiles: default double-buffered pipeline; ragged last block is masked.
    row_in = pl.BlockSpec((tm_eff, D), lambda i: (i, 0))
    row_out = pl.BlockSpec((tm_eff, Dp), lambda i: (i, 0))
    # Constant-index operands: single buffer (block index never changes).
    const = lambda shape: pl.BlockSpec(shape, lambda i: (0, 0),
                                       pipeline_mode=pl.Buffered(1))

    cost = pl.CostEstimate(
        flops=2 * N * D * Hp + 2 * N * Hp * Dp,         # two matmuls
        transcendentals=N * Hp + 2 * N,                 # tanh (GELU) + 2 rsqrt/row
        bytes_accessed=(N * D * x2.dtype.itemsize       # x in
                        + N * Dp * jnp.dtype(out_dtype).itemsize  # out
                        + (D * Hp + Hp * Dp) * 2        # bf16 weights
                        + (3 * Hp + 3 * Dp) * 4),       # vectors
    )

    out = pl.pallas_call(
        kernel,
        out_shape=jax.ShapeDtypeStruct((N, Dp), out_dtype),
        grid_spec=pltpu.PrefetchScalarGridSpec(
            num_scalar_prefetch=0,
            grid=(n_tiles,),
            in_specs=[
                row_in,                                          # x row tile
                const((D, Hp)),                                  # W1 (bf16)
                const((1, Hp)), const((1, Hp)), const((1, Hp)),  # b1, ln1 g, ln1 b
                const((Hp, Dp)),                                 # W2 (bf16)
                const((1, Dp)), const((1, Dp)), const((1, Dp)),  # b2, ln2 g, ln2 b
            ],
            out_specs=row_out,
        ),
        compiler_params=pltpu.CompilerParams(
            dimension_semantics=("parallel",),
            vmem_limit_bytes=vmem_limit,
        ),
        cost_estimate=cost,
    )(x2, w1, b1, g1, be1, w2, b2, g2, be2)

    if Dp != D:
        out = out[:, :D]           # strip lane padding (only when D % 128 != 0)
    return out.reshape(orig_shape)


def init_params(key, feature_dim):
    """Raw f32 parameters; weights stored as (in_features, out_features)."""
    D = feature_dim
    H = 2 * D
    k1, k2 = jax.random.split(key, 2)
    w1 = jax.random.normal(k1, (D, H), jnp.float32) * 0.02
    b1 = jnp.zeros((H,), jnp.float32)
    g1 = jnp.ones((H,), jnp.float32)
    be1 = jnp.zeros((H,), jnp.float32)
    w2 = jax.random.normal(k2, (H, D), jnp.float32) * 0.02
    b2 = jnp.zeros((D,), jnp.float32)
    g2 = jnp.ones((D,), jnp.float32)
    be2 = jnp.zeros((D,), jnp.float32)
    return (w1, b1, g1, be1, w2, b2, g2, be2)


def prepare_params(params, feature_dim):
    """ONE-TIME prep (outside the per-call path): pad feature dims up to
    multiples of 128 for lane-dense MXU/store shapes and cast weights to bf16.
    Padded gamma/beta/bias/weight entries are zero so padded lanes stay 0."""
    D = feature_dim
    H = 2 * D
    Hp = _round_up(H, 128)
    Dp = _round_up(D, 128)
    w1, b1, g1, be1, w2, b2, g2, be2 = params

    def pad_cols(v, width):
        v = jnp.asarray(v, jnp.float32).reshape(1, -1)
        return jnp.pad(v, ((0, 0), (0, width - v.shape[1])))

    w1p = jnp.pad(jnp.asarray(w1, jnp.float32),
                  ((0, 0), (0, Hp - H))).astype(jnp.bfloat16)
    w2p = jnp.pad(jnp.asarray(w2, jnp.float32),
                  ((0, Hp - H), (0, Dp - D))).astype(jnp.bfloat16)
    return (w1p, pad_cols(b1, Hp), pad_cols(g1, Hp), pad_cols(be1, Hp),
            w2p, pad_cols(b2, Dp), pad_cols(g2, Dp), pad_cols(be2, Dp))


def reference(x, params):
    """Pure-JAX f32 reference (torch semantics: exact erf GELU, eval dropout)."""
    w1, b1, g1, be1, w2, b2, g2, be2 = params

    def ln(h, g, b):
        mu = jnp.mean(h, axis=-1, keepdims=True)
        d = h - mu
        var = jnp.mean(d * d, axis=-1, keepdims=True)
        return d * jax.lax.rsqrt(var + _LN_EPS) * g + b

    h = x @ w1 + b1
    h = ln(h, g1, be1)
    h = jax.nn.gelu(h, approximate=False)
    y = h @ w2 + b2
    y = ln(y, g2, be2)
    return y


if __name__ == "__main__":
    key = jax.random.PRNGKey(0)
    kx, kp = jax.random.split(key)

    B, S, D = 2, 8, 32          # feature_dim = 32, hidden = 64, rows = 16
    x = jax.random.normal(kx, (B, S, D), jnp.float32)
    raw_params = init_params(kp, D)
    prepared = prepare_params(raw_params, D)   # one-time bf16 + lane padding

    out = mask_predictor(x, prepared)
    out = jax.block_until_ready(out)

    ref = reference(x.reshape(-1, D), raw_params).reshape(B, S, D)
    assert out.shape == (B, S, D)
    err = float(jnp.max(jnp.abs(out - ref)))
    # bf16 MXU inputs + tanh-approx GELU vs pure-f32 exact reference.
    assert jnp.allclose(out, ref, atol=5e-2, rtol=5e-2), f"mismatch (max err {err})"

    print("KERNEL_OK")
</pallas_src>

<mosaic_0001>
module attributes {stable_mosaic.version = 11 : i64} {
  func.func @mask_predictor_kernel(%arg0: i32, %arg1: memref<8x32xf32, #tpu.memory_space<vmem>>, %arg2: memref<32x128xbf16, #tpu.memory_space<vmem>>, %arg3: memref<1x128xf32, #tpu.memory_space<vmem>>, %arg4: memref<1x128xf32, #tpu.memory_space<vmem>>, %arg5: memref<1x128xf32, #tpu.memory_space<vmem>>, %arg6: memref<128x128xbf16, #tpu.memory_space<vmem>>, %arg7: memref<1x128xf32, #tpu.memory_space<vmem>>, %arg8: memref<1x128xf32, #tpu.memory_space<vmem>>, %arg9: memref<1x128xf32, #tpu.memory_space<vmem>>, %arg10: memref<8x128xf32, #tpu.memory_space<vmem>>) attributes {dimension_semantics = [#tpu.dimension_semantics<parallel>], iteration_bounds = array<i64: 2>, scalar_prefetch = 0 : i64, scratch_operands = 0 : i64, tpu.core_type = #tpu.core_type<tc>, window_params = [{transform_indices = @transform_0, window_bounds = array<i64: 8, 32>}, {pipeline_mode = #tpu.pipeline_mode<synchronous>, transform_indices = @transform_1, window_bounds = array<i64: 32, 128>}, {pipeline_mode = #tpu.pipeline_mode<synchronous>, transform_indices = @transform_2, window_bounds = array<i64: 1, 128>}, {pipeline_mode = #tpu.pipeline_mode<synchronous>, transform_indices = @transform_3, window_bounds = array<i64: 1, 128>}, {pipeline_mode = #tpu.pipeline_mode<synchronous>, transform_indices = @transform_4, window_bounds = array<i64: 1, 128>}, {pipeline_mode = #tpu.pipeline_mode<synchronous>, transform_indices = @transform_5, window_bounds = array<i64: 128, 128>}, {pipeline_mode = #tpu.pipeline_mode<synchronous>, transform_indices = @transform_6, window_bounds = array<i64: 1, 128>}, {pipeline_mode = #tpu.pipeline_mode<synchronous>, transform_indices = @transform_7, window_bounds = array<i64: 1, 128>}, {pipeline_mode = #tpu.pipeline_mode<synchronous>, transform_indices = @transform_8, window_bounds = array<i64: 1, 128>}, {transform_indices = @transform_9, window_bounds = array<i64: 8, 128>}]} {
    %c0 = arith.constant 0 : index
    %c0_0 = arith.constant 0 : index
    %0 = vector.load %arg1[%c0, %c0_0] : memref<8x32xf32, #tpu.memory_space<vmem>>, vector<8x32xf32>
    %1 = arith.truncf %0 : vector<8x32xf32> to vector<8x32xbf16>
    %c0_1 = arith.constant 0 : index
    %c0_2 = arith.constant 0 : index
    %2 = vector.load %arg2[%c0_1, %c0_2] : memref<32x128xbf16, #tpu.memory_space<vmem>>, vector<32x128xbf16>
    %cst = arith.constant dense<0.000000e+00> : vector<8x128xf32>
    %3 = tpu.matmul %1, %2, %cst {dimension_numbers = #tpu.dot_dimension_numbers<[1], [0], [0], [1], [0, 0, 1, 1], [], []>} : vector<8x32xbf16>, vector<32x128xbf16>, vector<8x128xf32> -> vector<8x128xf32>
    %c0_3 = arith.constant 0 : index
    %c0_4 = arith.constant 0 : index
    %4 = vector.load %arg3[%c0_3, %c0_4] : memref<1x128xf32, #tpu.memory_space<vmem>>, vector<1x128xf32>
    %5 = vector.broadcast %4 : vector<1x128xf32> to vector<8x128xf32>
    %6 = arith.addf %3, %5 : vector<8x128xf32>
    %c0_5 = arith.constant 0 : index
    %c0_6 = arith.constant 0 : index
    %7 = vector.load %arg4[%c0_5, %c0_6] : memref<1x128xf32, #tpu.memory_space<vmem>>, vector<1x128xf32>
    %c0_7 = arith.constant 0 : index
    %c0_8 = arith.constant 0 : index
    %8 = vector.load %arg5[%c0_7, %c0_8] : memref<1x128xf32, #tpu.memory_space<vmem>>, vector<1x128xf32>
    %cst_9 = arith.constant dense<0.000000e+00> : vector<8xf32>
    %9 = vector.multi_reduction <add>, %6, %cst_9 [1] : vector<8x128xf32> to vector<8xf32>
    %10 = vector.shape_cast %9 : vector<8xf32> to vector<8x1xf32>
    %cst_10 = arith.constant 1.562500e-02 : f32
    %11 = vector.broadcast %cst_10 : f32 to vector<8x1xf32>
    %12 = arith.mulf %10, %11 : vector<8x1xf32>
    %13 = vector.broadcast %12 : vector<8x1xf32> to vector<8x128xf32>
    %14 = arith.subf %6, %13 : vector<8x128xf32>
    %15 = arith.mulf %14, %14 : vector<8x128xf32>
    %16 = tpu.iota {dimensions = array<i32: 1>} : vector<1x128xi32>
    %c64_i32 = arith.constant 64 : i32
    %17 = vector.broadcast %c64_i32 : i32 to vector<1x128xi32>
    %18 = arith.cmpi slt, %16, %17 : vector<1x128xi32>
    %cst_11 = arith.constant 0.000000e+00 : f32
    %19 = vector.shape_cast %18 : vector<1x128xi1> to vector<1x128xi1>
    %20 = vector.broadcast %19 : vector<1x128xi1> to vector<8x128xi1>
    %21 = vector.broadcast %cst_11 : f32 to vector<8x128xf32>
    %22 = arith.select %20, %15, %21 : vector<8x128xi1>, vector<8x128xf32>
    %cst_12 = arith.constant dense<0.000000e+00> : vector<8xf32>
    %23 = vector.multi_reduction <add>, %22, %cst_12 [1] : vector<8x128xf32> to vector<8xf32>
    %24 = vector.shape_cast %23 : vector<8xf32> to vector<8x1xf32>
    %cst_13 = arith.constant 1.562500e-02 : f32
    %25 = vector.broadcast %cst_13 : f32 to vector<8x1xf32>
    %26 = arith.mulf %24, %25 : vector<8x1xf32>
    %cst_14 = arith.constant 9.99999974E-6 : f32
    %27 = vector.broadcast %cst_14 : f32 to vector<8x1xf32>
    %28 = arith.addf %26, %27 : vector<8x1xf32>
    %29 = math.rsqrt %28 : vector<8x1xf32>
    %30 = vector.broadcast %29 : vector<8x1xf32> to vector<8x128xf32>
    %31 = arith.mulf %14, %30 : vector<8x128xf32>
    %32 = vector.broadcast %7 : vector<1x128xf32> to vector<8x128xf32>
    %33 = arith.mulf %31, %32 : vector<8x128xf32>
    %34 = vector.broadcast %8 : vector<1x128xf32> to vector<8x128xf32>
    %35 = arith.addf %33, %34 : vector<8x128xf32>
    %36 = arith.mulf %35, %35 : vector<8x128xf32>
    %37 = arith.mulf %35, %36 : vector<8x128xf32>
    %cst_15 = arith.constant 4.471500e-02 : f32
    %38 = vector.broadcast %cst_15 : f32 to vector<8x128xf32>
    %39 = arith.mulf %38, %37 : vector<8x128xf32>
    %40 = arith.addf %35, %39 : vector<8x128xf32>
    %cst_16 = arith.constant 0.797884583 : f32
    %41 = vector.broadcast %cst_16 : f32 to vector<8x128xf32>
    %42 = arith.mulf %41, %40 : vector<8x128xf32>
    %43 = math.tanh %42 : vector<8x128xf32>
    %cst_17 = arith.constant 1.000000e+00 : f32
    %44 = vector.broadcast %cst_17 : f32 to vector<8x128xf32>
    %45 = arith.addf %44, %43 : vector<8x128xf32>
    %cst_18 = arith.constant 5.000000e-01 : f32
    %46 = vector.broadcast %cst_18 : f32 to vector<8x128xf32>
    %47 = arith.mulf %46, %45 : vector<8x128xf32>
    %48 = arith.mulf %35, %47 : vector<8x128xf32>
    %49 = arith.truncf %48 : vector<8x128xf32> to vector<8x128xbf16>
    %c0_19 = arith.constant 0 : index
    %c0_20 = arith.constant 0 : index
    %50 = vector.load %arg6[%c0_19, %c0_20] : memref<128x128xbf16, #tpu.memory_space<vmem>>, vector<128x128xbf16>
    %cst_21 = arith.constant dense<0.000000e+00> : vector<8x128xf32>
    %51 = tpu.matmul %49, %50, %cst_21 {dimension_numbers = #tpu.dot_dimension_numbers<[1], [0], [0], [1], [0, 0, 1, 1], [], []>} : vector<8x128xbf16>, vector<128x128xbf16>, vector<8x128xf32> -> vector<8x128xf32>
    %c0_22 = arith.constant 0 : index
    %c0_23 = arith.constant 0 : index
    %52 = vector.load %arg7[%c0_22, %c0_23] : memref<1x128xf32, #tpu.memory_space<vmem>>, vector<1x128xf32>
    %53 = vector.broadcast %52 : vector<1x128xf32> to vector<8x128xf32>
    %54 = arith.addf %51, %53 : vector<8x128xf32>
    %c0_24 = arith.constant 0 : index
    %c0_25 = arith.constant 0 : index
    %55 = vector.load %arg8[%c0_24, %c0_25] : memref<1x128xf32, #tpu.memory_space<vmem>>, vector<1x128xf32>
    %c0_26 = arith.constant 0 : index
    %c0_27 = arith.constant 0 : index
    %56 = vector.load %arg9[%c0_26, %c0_27] : memref<1x128xf32, #tpu.memory_space<vmem>>, vector<1x128xf32>
    %cst_28 = arith.constant dense<0.000000e+00> : vector<8xf32>
    %57 = vector.multi_reduction <add>, %54, %cst_28 [1] : vector<8x128xf32> to vector<8xf32>
    %58 = vector.shape_cast %57 : vector<8xf32> to vector<8x1xf32>
    %cst_29 = arith.constant 3.125000e-02 : f32
    %59 = vector.broadcast %cst_29 : f32 to vector<8x1xf32>
    %60 = arith.mulf %58, %59 : vector<8x1xf32>
    %61 = vector.broadcast %60 : vector<8x1xf32> to vector<8x128xf32>
    %62 = arith.subf %54, %61 : vector<8x128xf32>
    %63 = arith.mulf %62, %62 : vector<8x128xf32>
    %64 = tpu.iota {dimensions = array<i32: 1>} : vector<1x128xi32>
    %c32_i32 = arith.constant 32 : i32
    %65 = vector.broadcast %c32_i32 : i32 to vector<1x128xi32>
    %66 = arith.cmpi slt, %64, %65 : vector<1x128xi32>
    %cst_30 = arith.constant 0.000000e+00 : f32
    %67 = vector.shape_cast %66 : vector<1x128xi1> to vector<1x128xi1>
    %68 = vector.broadcast %67 : vector<1x128xi1> to vector<8x128xi1>
    %69 = vector.broadcast %cst_30 : f32 to vector<8x128xf32>
    %70 = arith.select %68, %63, %69 : vector<8x128xi1>, vector<8x128xf32>
    %cst_31 = arith.constant dense<0.000000e+00> : vector<8xf32>
    %71 = vector.multi_reduction <add>, %70, %cst_31 [1] : vector<8x128xf32> to vector<8xf32>
    %72 = vector.shape_cast %71 : vector<8xf32> to vector<8x1xf32>
    %cst_32 = arith.constant 3.125000e-02 : f32
    %73 = vector.broadcast %cst_32 : f32 to vector<8x1xf32>
    %74 = arith.mulf %72, %73 : vector<8x1xf32>
    %cst_33 = arith.constant 9.99999974E-6 : f32
    %75 = vector.broadcast %cst_33 : f32 to vector<8x1xf32>
    %76 = arith.addf %74, %75 : vector<8x1xf32>
    %77 = math.rsqrt %76 : vector<8x1xf32>
    %78 = vector.broadcast %77 : vector<8x1xf32> to vector<8x128xf32>
    %79 = arith.mulf %62, %78 : vector<8x128xf32>
    %80 = vector.broadcast %55 : vector<1x128xf32> to vector<8x128xf32>
    %81 = arith.mulf %79, %80 : vector<8x128xf32>
    %82 = vector.broadcast %56 : vector<1x128xf32> to vector<8x128xf32>
    %83 = arith.addf %81, %82 : vector<8x128xf32>
    %c0_34 = arith.constant 0 : index
    %c0_35 = arith.constant 0 : index
    %84 = vector.load %arg10[%c0_34, %c0_35] : memref<8x128xf32, #tpu.memory_space<vmem>>, vector<8x128xf32>
    tpu.vector_store %arg10[%c0_34, %c0_35], %83 {strides = array<i32>} : memref<8x128xf32, #tpu.memory_space<vmem>>, vector<8x128xf32>,
    return
  }
  func.func @transform_0(%arg0: i32) -> (i32, i32) {
    %c0_i32 = arith.constant 0 : i32
    %c0_i32_0 = arith.constant 0 : i32
    return %arg0, %c0_i32 : i32, i32
  }
  func.func @transform_1(%arg0: i32) -> (i32, i32) {
    %c0_i32 = arith.constant 0 : i32
    %c0_i32_0 = arith.constant 0 : i32
    %c0_i32_1 = arith.constant 0 : i32
    return %c0_i32, %c0_i32_0 : i32, i32
  }
  func.func @transform_2(%arg0: i32) -> (i32, i32) {
    %c0_i32 = arith.constant 0 : i32
    %c0_i32_0 = arith.constant 0 : i32
    %c0_i32_1 = arith.constant 0 : i32
    return %c0_i32, %c0_i32_0 : i32, i32
  }
  func.func @transform_3(%arg0: i32) -> (i32, i32) {
    %c0_i32 = arith.constant 0 : i32
    %c0_i32_0 = arith.constant 0 : i32
    %c0_i32_1 = arith.constant 0 : i32
    return %c0_i32, %c0_i32_0 : i32, i32
  }
  func.func @transform_4(%arg0: i32) -> (i32, i32) {
    %c0_i32 = arith.constant 0 : i32
    %c0_i32_0 = arith.constant 0 : i32
    %c0_i32_1 = arith.constant 0 : i32
    return %c0_i32, %c0_i32_0 : i32, i32
  }
  func.func @transform_5(%arg0: i32) -> (i32, i32) {
    %c0_i32 = arith.constant 0 : i32
    %c0_i32_0 = arith.constant 0 : i32
    %c0_i32_1 = arith.constant 0 : i32
    return %c0_i32, %c0_i32_0 : i32, i32
  }
  func.func @transform_6(%arg0: i32) -> (i32, i32) {
    %c0_i32 = arith.constant 0 : i32
    %c0_i32_0 = arith.constant 0 : i32
    %c0_i32_1 = arith.constant 0 : i32
    return %c0_i32, %c0_i32_0 : i32, i32
  }
  func.func @transform_7(%arg0: i32) -> (i32, i32) {
    %c0_i32 = arith.constant 0 : i32
    %c0_i32_0 = arith.constant 0 : i32
    %c0_i32_1 = arith.constant 0 : i32
    return %c0_i32, %c0_i32_0 : i32, i32
  }
  func.func @transform_8(%arg0: i32) -> (i32, i32) {
    %c0_i32 = arith.constant 0 : i32
    %c0_i32_0 = arith.constant 0 : i32
    %c0_i32_1 = arith.constant 0 : i32
    return %c0_i32, %c0_i32_0 : i32, i32
  }
  func.func @transform_9(%arg0: i32) -> (i32, i32) {
    %c0_i32 = arith.constant 0 : i32
    %c0_i32_0 = arith.constant 0 : i32
    return %arg0, %c0_i32 : i32, i32
  }
}

</mosaic_0001>

<bundles_post_ra>
// kernel: mask_predictor.1
= control target key start
LH: loop header
LB: loop body
LE: loop exit
PB: predicated region body
PF: predicated region fallthrough
CT: control target
= control target key end

     0   :  { %14 = vsyncpa [#allocation3], 0  ;;  %s1195_s0 = inlined_call_operand.hbm [shape: f32[16,32], index: 0, kind: input, shape index: {}]   ;;  %s1196_s1 = inlined_call_operand.hbm [shape: bf16[32,128], index: 1, kind: input, shape index: {}]   ;;  %s1197_s2 = inlined_call_operand.vmem [shape: f32[1,128], index: 2, kind: input, shape index: {}]   ;;  %s1198_s3 = inlined_call_operand.vmem [shape: f32[1,128], index: 3, kind: input, shape index: {}]   ;;  %s1199_s4 = inlined_call_operand.vmem [shape: f32[1,128], index: 4, kind: input, shape index: {}]   ;;  %s1200_s5 = inlined_call_operand.hbm [shape: bf16[128,128], index: 5, kind: input, shape index: {}]   ;;  %s1201_s6 = inlined_call_operand.vmem [shape: f32[1,128], index: 6, kind: input, shape index: {}]   ;;  %s1202_s7 = inlined_call_operand.vmem [shape: f32[1,128], index: 7, kind: input, shape index: {}]   ;;  %s1203_s8 = inlined_call_operand.vmem [shape: f32[1,128], index: 8, kind: input, shape index: {}]   ;;  %s1204_s9 = inlined_call_operand.vmem [shape: f32[16,128], index: 9, kind: output, shape index: {}]  }
   0x1   :  { %16 = vsyncpa [#allocation3 + $0x1], 0 }
   0x2   :  { %17 = vsyncpa [#allocation5], 0  ;;  %s1045_s30 = smov 0   ;;  %s1047_s10 = smov 0  }
   0x3   :  { %s1049_s11 = smov 0   ;;  %s1051_s12 = smov 0  }
   0x4 LB: > { %s1064_s13 = sadd.s32 4294967295, %s986_s12   ;;  %p43_p0 = scmp.ne.s32.totalorder %s978_s10, %s974_s30  ;;  %s986_s12 = sphi %s1051_s12, %s1219_s12   ;;  %s982_s11 = sphi %s1049_s11, %s1218_s11   ;;  %s978_s10 = sphi %s1047_s10, %s1217_s10   ;;  %s974_s30 = sphi %s1045_s30, %s1216_s30  }
   0x5   : > { %p1205_p1 = scmp.eq.s32.totalorder %s1064_s13, 0  ;;  %p718_p2 = scmp.ge.s32.totalorder %s986_s12, 1 }
   0x6   : > { %p248_p3 = scmp.lt.s32.totalorder %s986_s12, 3  ;;  %s988_s16 = smov [#allocation4]  }
   0x7   : > { %p1072_p4 = por %p1205_p1, %p43_p0  ;;  %s260_s17 = sshll.u32 %s988_s16, 4  ;;  %s261_s17 = int_to_ptr.vmem [resolvable:$true] %s260_s17 }
   0x8   : > { %p1076_p5 = pnand %p718_p2, %p248_p3  ;;  %s989_s19 = smov [#allocation6]  }
   0x9   : > { %s1208_s14 = scalar_select %p1072_p4, 1, 0 }
   0xa   : > { %s1209_s15 = scalar_select %p1076_p5, 1, 0 }
   0xb   : > { %p798_p6 = pneg %p1076_p5  ;;  %s282_s20 = sshll.u32 %s989_s19, 4  ;;  %s283_s20 = int_to_ptr.vmem [resolvable:$true] %s282_s20 }
   0xc   : > { %s879_s21 = scalar_lea.vmem %s261_s17, 256  ;;  %p887_p12 = scmp.lt.s32.totalorder %s261_s17, %s261_s17 }
   0xd   : > { %p1084_p7 = pnand %p798_p6, %p1205_p1  ;;  %p880_p9 = scmp.ne.s32.totalorder %s261_s17, %s879_s21 }
   0xe   : > { %p888_p13 = scmp.lt.s32.totalorder %s879_s21, %s879_s21 }
   0xf   : > { %p870_p8 = pneg %p1084_p7 }
  0x10   : > { %p889_p0 = por %p888_p13, %p887_p12 }
  0x11   : > { %p882_p10 = pnand %p880_p9, %p870_p8 }
  0x13   : > { %p883_p11 = pneg %p882_p10 }
  0x15   : > { %p890_p2 = pnand %p889_p0, %p883_p11 }
  0x17   : > { %893 = shalt.err (!%p890_p2)
}
  0x18   : > { %s990_s22 = smov 64   ;;  %s991_s23 = smov 4  }
  0x19   : > { %801 = dma.hbm_to_vmem [thread:$0]  (!%p1084_p7), %s1196_s1, 256, %s261_s17, [#allocation5], %s990_s22, %s990_s22, %s991_s23  }
  0x1a   : > { %s905_s26 = scalar_lea.vmem %s283_s20, 1024  ;;  %p913_p10 = scmp.lt.s32.totalorder %s283_s20, %s283_s20 }
  0x1b   : > { %p906_p3 = scmp.ne.s32.totalorder %s283_s20, %s905_s26  ;;  %p914_p1 = scmp.lt.s32.totalorder %s905_s26, %s905_s26 }
  0x1d   : > { %p908_p6 = pnand %p906_p3, %p870_p8  ;;  %p915_p12 = por %p914_p1, %p913_p10 }
  0x1f   : > { %p909_p9 = pneg %p908_p6 }
  0x21   : > { %p916_p11 = pnand %p915_p12, %p909_p9 }
  0x23   : > { %919 = shalt.err (!%p916_p11)
}
  0x24   : > { %804 = dma.hbm_to_vmem [thread:$0]  (!%p1084_p7), %s1200_s5, 1024, %s283_s20, [#allocation5], %s990_s22, %s990_s22, %s991_s23  }
  0x25   : > { %s1107_s29 = sadd.s32 1, %s986_s12   ;;  %s30_s30 = sadd.s32 1, %s982_s11 }
  0x26   : > { %s27_s16 = ssub.s32 %s986_s12, %s1107_s29  ;;  %p37_p1 = scmp.ne.s32.totalorder %s982_s11, %s978_s10 }
  0x27   : > { %p28_p8 = scmp.eq.s32.totalorder %s27_s16, 0  ;;  %p38_p13 = scmp.eq.s32.totalorder %s986_s12, 0 }
  0x28   : > { %p811_p0 = scmp.lt.s32.totalorder %s986_s12, 2  ;;  %s305_s17 = sand.u32 1, %s982_s11  }
  0x29   : > { %s1118_s18 = scalar_select %p28_p8, %s982_s11, %s30_s30  }
  0x2a   : > { %p39_p2 = por %p38_p13, %p37_p1  ;;  %s722_s19 = sshll.u32 %s305_s17, 3 }
  0x2b   : > { %s723_s21 = sshll.u32 %s986_s12, 7  ;;  %s309_s20 = scalar_lea.vmem [#allocation2], %s722_s19 }
  0x2c   : > { %s1124_s26 = scalar_lea.hbm %s1195_s0, %s723_s21  ;;  %s316_s22 = sshll.u32 %s309_s20, 4  ;;  %s317_s22 = int_to_ptr.vmem [resolvable:$true] %s316_s22 }
  0x2d   : > { %p1126_p7 = pnand %p811_p0, %p39_p2  ;;  %s306_s27 = scalar_lea.sflag [#allocation3], %s305_s17 }
  0x2e   : > { %s920_s28 = scalar_lea.hbm %s1124_s26, 128  ;;  %s925_s16 = scalar_lea.hbm %s1195_s0, 256 }
  0x2f   : > { %p921_p3 = scmp.ne.s32.totalorder %s1124_s26, %s920_s28  ;;  %p922_p6 = pneg %p1126_p7 }
  0x30   : > { %p926_p12 = scmp.lt.s32.totalorder %s1124_s26, %s1195_s0  ;;  %p927_p11 = scmp.lt.s32.totalorder %s925_s16, %s920_s28 }
  0x31   : > { %p923_p9 = pnand %p922_p6, %p921_p3 }
  0x32   : > { %p928_p1 = por %p927_p11, %p926_p12 }
  0x33   : > { %p924_p10 = pneg %p923_p9 }
  0x35   : > { %p929_p8 = pnand %p928_p1, %p924_p10 }
  0x37   : > { %932 = shalt.err (!%p929_p8)
}
  0x38   : > { %s933_s24 = scalar_lea.vmem %s317_s22, 128  ;;  %s992_s17 = smov [#allocation2]  }
  0x39   : > { %p934_p13 = scmp.ne.s32.totalorder %s317_s22, %s933_s24  ;;  %s938_s25 = sshll.u32 %s992_s17, 4  ;;  %s939_s25 = int_to_ptr.vmem [resolvable:$false] %s938_s25 }
  0x3a   : > { %s940_s20 = scalar_lea.vmem %s939_s25, 256  ;;  %p941_p3 = scmp.lt.s32.totalorder %s317_s22, %s939_s25 }
  0x3b   : > { %p936_p0 = pnand %p934_p13, %p922_p6  ;;  %p942_p9 = scmp.lt.s32.totalorder %s940_s20, %s933_s24 }
  0x3d   : > { %p937_p2 = pneg %p936_p0  ;;  %p943_p4 = por %p942_p9, %p941_p3 }
  0x3f   : > { %p944_p5 = pnand %p943_p4, %p937_p2 }
  0x41   : > { %947 = shalt.err (!%p944_p5)
}
  0x42   : > { %808 = dma.hbm_to_vmem [thread:$0]  (!%p1126_p7), %s1124_s26, 128, %s317_s22, %s306_s27  }
  0x43   : > { %p1212_p10 = scmp.ne.s32.totalorder %s1209_s15, 0 }
  0x44   : > { %s327_s28 = sand.u32 (!%p1212_p10), 1, %s978_s10   ;;  %p1213_p6 = scmp.ne.s32.totalorder (!%p1212_p10), %s1208_s14, 0 }
  0x45   : > { %325 = sbr.rel (%p1212_p10) target bundleno = 1125 (0x465), region = 56  ;;  %s725_s12 = sshll.u32 (!%p1212_p10), %s327_s28, 3 }
  0x46   : > { %s328_s30 = scalar_lea.sflag (!%p1212_p10), [#allocation3], %s327_s28  ;;  %s331_s16 = scalar_lea.vmem (!%p1212_p10), [#allocation2], %s725_s12 }
  0x4a   : > { %965 = dma.done.wait (%p1213_p6), %s328_s30, 128  }
  0x4b   : > { %967 = vsyncadd (%p1213_p6), %s328_s30, 4294967168  ;;  %p1214_p4 = scmp.eq.s32.totalorder %s1064_s13, 0 }
  0x4d   : > { %969 = dma.done.wait (%p1214_p4), [#allocation5], 1280   ;;  %p1215_p5 = pmov %p1214_p4 }
  0x4e   : > { %v993_v0 = vmov 0.0   ;;  %vm994_vm0 = vmmov 0   ;;  %v852_v1 = vld [vmem:[#allocation4 + $0x8] sm:$0xff]   ;;  %v853_v2 = vld [vmem:[#allocation4] sm:$0xff]   ;;  %v378_v3 = vld [vmem:[%s331_s16] sm:$0xff]  ;;  %vm403_vm1 = vcmask 261120   ;;  %v454_v11 = vlaneseq }
  0x4f   : > { %971 = vsyncadd (%p1215_p5), [#allocation5], 4294966016  ;;  %760 = vmatprep.subr.bf16.mxu0 %v993_v0  ;;  %764 = vmatprep.mubr.msk.bf16.mxu0 %vm994_vm0, %v993_v0  ;;  %v379_v4 = vpack.c.bf16 %v378_v3, %v378_v3  ;;  %v729_v5 = vld [vmem:[%s1197_s2] ss:$0 sm:$0xff]  ;;  %v854_v18 = vld [vmem:[#allocation6 + $0x38] sm:$0xff]   ;;  %p373_p7 = scmp.lt.s32.totalorder %s1064_s13, 1 }
  0x50   : > { %768 = vmatprep.subr.bf16.mxu1 %v993_v0  ;;  %784 = vmatprep.mubr.msk.bf16.mxu1 %vm994_vm0, %v993_v0  ;;  %v1158_v13 = vand.u32 127, %v454_v11  ;;  %v855_v19 = vld [vmem:[#allocation6 + $0x30] sm:$0xff]   ;;  %v856_v20 = vld [vmem:[#allocation6 + $0x28] sm:$0xff]   ;;  %v857_v21 = vld [vmem:[#allocation6 + $0x20] sm:$0xff]  }
  0x51   : > { %761 = vmatpush3.bf16.msra.mxu0 %v852_v1  ;;  %769 = vmatpush3.bf16.msra.mxu1 %v854_v18  ;;  %v858_v22 = vld [vmem:[#allocation6 + $0x18] sm:$0xff]   ;;  %v859_v23 = vld [vmem:[#allocation6 + $0x10] sm:$0xff]   ;;  %v860_v24 = vld [vmem:[#allocation6 + $0x8] sm:$0xff]   ;;  %s1221_s13 = smov (!%p373_p7, %s1064_s13), 1 }
  0x52   : > { %762 = vmatprep.subr.bf16.mxu0 %v993_v0  ;;  %vm456_vm2 = vcmp.lt.s32.totalorder %v1158_v13, 64  ;;  %770 = vmatprep.subr.bf16.mxu1 %v993_v0  ;;  %v861_v25 = vld [vmem:[#allocation6] sm:$0xff]   ;;  %vm608_vm3 = vcmp.lt.s32.totalorder %v1158_v13, 32  ;;  %s728_s25 = sshll.u32 %s1221_s13, 3 }
  0x53   : > { %v733_v30 = vld [vmem:[%s1198_s3] ss:$0 sm:$0xff]  ;;  %s376_s16 = scalar_lea.vmem %s1204_s9, %s728_s25 }
  0x54   : > { %v734_v32 = vld [vmem:[%s1199_s4] ss:$0 sm:$0xff] }
  0x55   : > { %763 = vmatpush3.bf16.msra.mxu0 %v853_v2  ;;  %771 = vmatpush3.bf16.msra.mxu1 %v855_v19  ;;  %v735_v45 = vld [vmem:[%s1201_s6] ss:$0 sm:$0xff] }
  0x56   : > { %772 = vmatprep.subr.bf16.mxu1 %v993_v0  ;;  %v744_v60 = vld [vmem:[%s1202_s7] ss:$0 sm:$0xff] }
  0x57   : > { %v745_v62 = vld [vmem:[%s1203_s8] ss:$0 sm:$0xff] }
  0x58   : > { %765 = vmatmul.mubr.msk.bf16.vlgmr.msra.gmra.mxu0 %vm403_vm1, %v379_v4 }
  0x59   : > { %773 = vmatpush3.bf16.msra.mxu1 %v856_v20 }
  0x5a   : > { %774 = vmatprep.subr.bf16.mxu1 %v993_v0 }
  0x5d   : > { %775 = vmatpush3.bf16.msra.mxu1 %v857_v21 }
  0x5e   : > { %776 = vmatprep.subr.bf16.mxu1 %v993_v0 }
  0x61   : > { %777 = vmatpush3.bf16.msra.mxu1 %v858_v22 }
  0x62   : > { %778 = vmatprep.subr.bf16.mxu1 %v993_v0 }
  0x65   : > { %779 = vmatpush3.bf16.msra.mxu1 %v859_v23 }
  0x66   : > { %780 = vmatprep.subr.bf16.mxu1 %v993_v0 }
  0x69   : > { %781 = vmatpush3.bf16.msra.mxu1 %v860_v24 }
  0x6a   : > { %782 = vmatprep.subr.bf16.mxu1 %v993_v0 }
  0x6d   : > { %783 = vmatpush3.bf16.msra.mxu1 %v861_v25 }
 0x118   : > { %v441_v6 = vpop.f32.mrf.mxu0 }
 0x119   : > { %v442_v7 = vadd.f32 %v729_v5, %v441_v6 }
 0x11a   : > { %v766_v8 = vpop.f32.mrf.mxu0 }
 0x11b   : > { %449 = vadd.xlane.f32.xlu0 %v442_v7 }
 0x11c   : > { %v444_v9 = vpop.f32.mrf.mxu0 }
 0x11e   : > { %v767_v10 = vpop.f32.mrf.mxu0 }
 0x1a4   : > { %v450_v12 = vpop.xlane.xlu0 %449 }
 0x1a5   : > { %v451_v14 = vmul.f32 0.015625, %v450_v12 }
 0x1a7   : > { %v452_v15 = vsub.f32 %v442_v7, %v451_v14 }
 0x1a9   : > { %v453_v16 = vmul.f32 %v452_v15, %v452_v15 }
 0x1ab   : > { %v459_v17 = vsel %vm456_vm2, %v453_v16, 0.0 }
 0x1ac   : > { %460 = vadd.xlane.f32.xlu0 %v459_v17 }
 0x235   : > { %v461_v26 = vpop.xlane.xlu0 %460 }
 0x236   : > { %v462_v27 = vmul.f32 0.015625, %v461_v26 }
 0x238   : > { %v463_v28 = vadd.f32 1e-05, %v462_v27 }
 0x23a   : > { %862 = vrsqrt.f32 %v463_v28 }
 0x247   : > { %v863_v29 = vpop.eup %862 }
 0x248   : > { %v465_v31 = vmul.f32 %v863_v29, %v452_v15 }
 0x24a   : > { %v472_v33 = vmul.f32 %v733_v30, %v465_v31 }
 0x24c   : > { %v479_v34 = vadd.f32 %v734_v32, %v472_v33 }
 0x24e   : > { %v480_v35 = vmul.f32 %v479_v34, %v479_v34 }
 0x250   : > { %v481_v36 = vmul.f32 %v480_v35, %v479_v34 }
 0x252   : > { %v482_v37 = vmul.f32 0.044715, %v481_v36 }
 0x254   : > { %v483_v38 = vadd.f32 %v482_v37, %v479_v34 }
 0x256   : > { %v484_v39 = vmul.f32 0.7978846, %v483_v38 }
 0x258   : > { %864 = vtanh.f32 %v484_v39 }
 0x265   : > { %v865_v40 = vpop.eup %864 }
 0x266   : > { %v486_v41 = vadd.f32 1.0, %v865_v40 }
 0x268   : > { %v487_v42 = vmul.f32 0.5, %v486_v41 }
 0x26a   : > { %v488_v43 = vmul.f32 %v487_v42, %v479_v34 }
 0x26c   : > { %v489_v44 = vpack.c.bf16 %v488_v43, %v488_v43 }
 0x26e   : > { %785 = vmatmul.mubr.bf16.vlgmr.msra.gmra.mxu1 %v489_v44 }
 0x32e   : > { %v595_v46 = vpop.f32.mrf.mxu1 }
 0x32f   : > { %v596_v47 = vadd.f32 %v735_v45, %v595_v46 }
 0x330   : > { %v786_v48 = vpop.f32.mrf.mxu1 }
 0x331   : > { %603 = vadd.xlane.f32.xlu1 %v596_v47 }
 0x332   : > { %v598_v49 = vpop.f32.mrf.mxu1 }
 0x334   : > { %v787_v50 = vpop.f32.mrf.mxu1 }
 0x3ba   : > { %v604_v51 = vpop.xlane.xlu1 %603 }
 0x3bb   : > { %v605_v52 = vmul.f32 0.03125, %v604_v51 }
 0x3bd   : > { %v606_v53 = vsub.f32 %v596_v47, %v605_v52 }
 0x3bf   : > { %v607_v54 = vmul.f32 %v606_v53, %v606_v53 }
 0x3c1   : > { %v611_v55 = vsel %vm608_vm3, %v607_v54, 0.0 }
 0x3c2   : > { %612 = vadd.xlane.f32.xlu1 %v611_v55 }
 0x44b   : > { %v613_v56 = vpop.xlane.xlu1 %612 }
 0x44c   : > { %v614_v57 = vmul.f32 0.03125, %v613_v56 }
 0x44e   : > { %v615_v58 = vadd.f32 1e-05, %v614_v57 }
 0x450   : > { %866 = vrsqrt.f32 %v615_v58 }
 0x45d   : > { %v867_v59 = vpop.eup %866 }
 0x45e   : > { %v617_v61 = vmul.f32 %v867_v59, %v606_v53 }
 0x460   : > { %v624_v63 = vmul.f32 %v744_v60, %v617_v61 }
 0x462   : > { %v631_v0 = vadd.f32 %v745_v62, %v624_v63 }
 0x464   : > { %632 = vst [vmem:[%s376_s16] sm:$0xff] %v631_v0 }
 0x465 PF: > { %p20_p12 = scmp.ge.s32.totalorder %s1107_s29, 4   ;;  %s1216_s30 = smov %s978_s10 }
 0x466   : > { %s1217_s10 = smov %s982_s11  ;;  %s1218_s11 = smov %s1118_s18 }
 0x467   : > { %s1219_s12 = smov %s1107_s29  ;;  %22 = sbr.rel (!%p20_p12) target bundleno = 4 (0x4), region = 104 }
 0x46c   :  { %652 = vsyncpa [#allocation3], 1 }
 0x46d   :  { %654 = vsyncpa [#allocation3 + $0x1], 1 }
 0x46e   :  { %655 = vsyncpa [#allocation5], 1 }

</bundles_post_ra>
